<compile_context>
chip_gen: v7x
topology: tpu7x:2x2x1
jax: 0.10.0
libtpu: 0.0.40
codegen_flags: <defaults>
</compile_context>

<pallas_src>
import numpy as np
import jax
import jax.numpy as jnp
from jax.experimental import pallas as pl
from jax.experimental.pallas import tpu as pltpu

NEG_INF = -1e30


# ---------------------------------------------------------------------------
# fused kernel body (closes over static sizes and folded scalars)
# ---------------------------------------------------------------------------
def _build_kernel(Nt, Nc, H, c1, c2, c3):
    def masked_softmax(logits, adj):
        # LeakyReLU(0.2) + softmax over incoming edges (lane axis).  Rows with
        # no incoming edges yield an all-zero attention row (PyG: bias only).
        lr = jnp.maximum(logits, 0.2 * logits)
        lm = jnp.where(adj > 0.0, lr, NEG_INF)
        m = jnp.max(lm, axis=1, keepdims=True)
        p = jnp.where(adj > 0.0, jnp.exp(lm - m), 0.0)
        s = jnp.sum(p, axis=1, keepdims=True)
        return p * pl.reciprocal(jnp.maximum(s, 1e-20), approx=True)

    def kernel(xnm_ref, xfm_ref, wp_ref, wpt_ref, wall_ref, vsrc_ref,
               att_ref, act_ref, wfin_ref, bias_ref, out_ref):
        f32 = jnp.float32

        # ---- pre-transform (HeteroDictLinear + ReLU), both node types at once
        h_all = jnp.maximum(
            jnp.dot(xnm_ref[...], wp_ref[...], preferred_element_type=f32), 0.0)
        # transposed (feature-major) copy so the SOURCE attention scores come
        # out row-shaped without any in-kernel transpose/relayout.
        h_all_t = jnp.maximum(
            jnp.dot(wpt_ref[...], xfm_ref[...], preferred_element_type=f32), 0.0)

        # ---- one fused projection: values of all 3 convs + dst attn scores
        proj = jnp.dot(h_all, wall_ref[...], preferred_element_type=f32)
        h_t = h_all[:Nt, :]                       # residual (skip connection)
        z_s2d = proj[:Nt, 0:H]                    # DirGAT src->dst values
        z_d2s = proj[:Nt, H:2 * H]                # DirGAT dst->src values
        z_cs = proj[Nt:, 2 * H:3 * H]             # ctx-edge source values
        ed_s2d = proj[:Nt, 3 * H:3 * H + 1]       # [Nt,1] destination scores
        ed_d2s = proj[:Nt, 3 * H + 1:3 * H + 2]
        ed_ct = proj[:Nt, 3 * H + 2:3 * H + 3]

        # ---- source attention scores, row-shaped, one matmul for all convs
        sc_rows = jnp.dot(vsrc_ref[...], h_all_t, preferred_element_type=f32)
        es_s2d = sc_rows[0:1, 0:Nt]               # [1, Nt]
        es_d2s = sc_rows[1:2, 0:Nt]
        es_ct = sc_rows[2:3, Nt:Nt + Nc]          # [1, Nc]

        # ---- masked softmax per edge type; HeteroConv 'mean' + DirGAT alpha
        #      already folded into c1/c2/c3 (post-softmax scaling is exact).
        attn_s2d = masked_softmax(ed_s2d + es_s2d, att_ref[0]) * c1
        attn_d2s = masked_softmax(ed_d2s + es_d2s, att_ref[1]) * c2
        attn_ct = masked_softmax(ed_ct + es_ct, act_ref[...]) * c3

        # ---- attention-weighted aggregation + fused bias + skip + ReLU
        agg = (jnp.dot(attn_s2d, z_s2d, preferred_element_type=f32)
               + jnp.dot(attn_d2s, z_d2s, preferred_element_type=f32)
               + jnp.dot(attn_ct, z_cs, preferred_element_type=f32))
        h = jnp.maximum(agg + bias_ref[0:1, :] + h_t, 0.0)

        # ---- final Linear(H, H)
        out_ref[...] = (jnp.dot(h, wfin_ref[...], preferred_element_type=f32)
                        + bias_ref[1:2, :])

    return kernel


# ---------------------------------------------------------------------------
# wrapper: host-side packing (free) + single pallas_call
# ---------------------------------------------------------------------------
def hetero_forecast_gat_forward(x_t, x_c, adj_tt, adj_ct, params, alpha=0.5):
    """Fused forward of HeteroForecastGATConv (heads=1, num_layers=1).

    x_t:[Nt,Ft], x_c:[Nc,Fc] raw node features.
    adj_tt:[Nt,Nt] binary dst-by-src adjacency of ('target','to','target')
      (self-loops are forced inside, matching GATConv add_self_loops=True).
    adj_ct:[Nt,Nc] binary dst-by-src adjacency of ('context','to','target').
    params: PyTorch-convention weights ([out,in]) / biases / attention vectors.
    """
    Nt, Ft = x_t.shape
    Nc, Fc = x_c.shape
    H = params["w_fin"].shape[0]
    f32 = jnp.float32
    c1 = 0.5 * (1.0 - alpha)      # HeteroConv mean * DirGAT (1 - alpha)
    c2 = 0.5 * alpha              # HeteroConv mean * DirGAT alpha
    c3 = 0.5                      # HeteroConv mean, context edge

    # block-diagonal augmented features: one matmul pre-transforms both types,
    # biases folded via the ones columns.
    xnm = jnp.zeros((Nt + Nc, Ft + Fc + 2), f32)
    xnm = xnm.at[:Nt, :Ft].set(x_t).at[:Nt, Ft].set(1.0)
    xnm = xnm.at[Nt:, Ft + 1:Ft + 1 + Fc].set(x_c).at[Nt:, Ft + 1 + Fc].set(1.0)
    xfm = xnm.T                                     # feature-major copy

    wp = jnp.concatenate(
        [params["w_pre_t"].T, params["b_pre_t"][None, :],
         params["w_pre_c"].T, params["b_pre_c"][None, :]], axis=0)
    wpt = wp.T

    # fused projection slab: [W_s2d^T | W_d2s^T | W_ct_src^T | dst-score cols | pad]
    v_dst_s2d = params["w_s2d"].T @ params["a_dst_s2d"]
    v_dst_d2s = params["w_d2s"].T @ params["a_dst_d2s"]
    v_dst_ct = params["w_ct_dst"].T @ params["a_dst_ct"]
    wall = jnp.concatenate(
        [params["w_s2d"].T, params["w_d2s"].T, params["w_ct_src"].T,
         v_dst_s2d[:, None], v_dst_d2s[:, None], v_dst_ct[:, None],
         jnp.zeros((H, 5), f32)], axis=1)           # [H, 3H+8]

    # source-score vectors as rows (consumed against the transposed features)
    vsrc = jnp.zeros((8, H), f32)
    vsrc = vsrc.at[0].set(params["w_s2d"].T @ params["a_src_s2d"])
    vsrc = vsrc.at[1].set(params["w_d2s"].T @ params["a_src_d2s"])
    vsrc = vsrc.at[2].set(params["w_ct_src"].T @ params["a_src_ct"])

    # adjacencies: self edge gets forced self-loops (GATConv add_self_loops=True);
    # the reversed-direction conv of DirGAT uses the transpose.
    a_s2d = jnp.maximum(adj_tt.astype(f32), jnp.eye(Nt, dtype=f32))
    att = jnp.stack([a_s2d, a_s2d.T], axis=0)       # [2, Nt, Nt]

    # fused biases: row 0 = folded conv biases, row 1 = final linear bias
    bias = jnp.stack(
        [c1 * params["b_s2d"] + c2 * params["b_d2s"] + c3 * params["b_ct"],
         params["b_fin"]], axis=0)                  # [2, H]

    kernel = _build_kernel(Nt, Nc, H, c1, c2, c3)
    vm = pl.BlockSpec(memory_space=pltpu.MemorySpace.VMEM)
    return pl.pallas_call(
        kernel,
        out_shape=jax.ShapeDtypeStruct((Nt, H), f32),
        in_specs=[vm] * 10,
        out_specs=vm,
    )(xnm, xfm, wp, wpt, wall, vsrc, att, adj_ct.astype(f32),
      params["w_fin"].T, bias)


# ---------------------------------------------------------------------------
# pure-JAX reference (dense-mask GAT formulation) for the sanity check
# ---------------------------------------------------------------------------
def _leaky_relu(x):
    return jnp.where(x >= 0, x, 0.2 * x)


def _gat_dense_ref(z_src, z_dst, a_src, a_dst, adj, bias):
    e_src = z_src @ a_src
    e_dst = z_dst @ a_dst
    logits = _leaky_relu(e_dst[:, None] + e_src[None, :])
    lm = jnp.where(adj > 0, logits, NEG_INF)
    m = jnp.max(lm, axis=1, keepdims=True)
    p = jnp.where(adj > 0, jnp.exp(lm - m), 0.0)
    s = jnp.maximum(jnp.sum(p, axis=1, keepdims=True), 1e-20)
    return (p / s) @ z_src + bias


def forward_ref(x_t, x_c, adj_tt, adj_ct, p, alpha):
    h_t = jax.nn.relu(x_t @ p["w_pre_t"].T + p["b_pre_t"])
    h_c = jax.nn.relu(x_c @ p["w_pre_c"].T + p["b_pre_c"])
    a_s2d = jnp.maximum(adj_tt, jnp.eye(adj_tt.shape[0], dtype=adj_tt.dtype))
    z_s2d = h_t @ p["w_s2d"].T
    z_d2s = h_t @ p["w_d2s"].T
    z_cs = h_c @ p["w_ct_src"].T
    z_cd = h_t @ p["w_ct_dst"].T
    out_s2d = _gat_dense_ref(z_s2d, z_s2d, p["a_src_s2d"], p["a_dst_s2d"],
                             a_s2d, p["b_s2d"])
    out_d2s = _gat_dense_ref(z_d2s, z_d2s, p["a_src_d2s"], p["a_dst_d2s"],
                             a_s2d.T, p["b_d2s"])
    out_ct = _gat_dense_ref(z_cs, z_cd, p["a_src_ct"], p["a_dst_ct"],
                            adj_ct, p["b_ct"])
    conv = 0.5 * ((1.0 - alpha) * out_s2d + alpha * out_d2s + out_ct)
    h = jax.nn.relu(conv + h_t)
    return h @ p["w_fin"].T + p["b_fin"]


# ---------------------------------------------------------------------------
if __name__ == "__main__":
    Nt, Nc, Ft, Fc, H = 8, 8, 16, 16, 32
    alpha = 0.5

    key = jax.random.PRNGKey(0)
    ks = jax.random.split(key, 32)

    x_t = jax.random.normal(ks[0], (Nt, Ft), jnp.float32)
    x_c = jax.random.normal(ks[1], (Nc, Fc), jnp.float32)

    # random edge lists -> binary dense dst-by-src adjacencies (duplicates collapse)
    E = 24
    src_tt = jax.random.randint(ks[2], (E,), 0, Nt)
    dst_tt = jax.random.randint(ks[3], (E,), 0, Nt)
    src_ct = jax.random.randint(ks[4], (E,), 0, Nc)
    dst_ct = jax.random.randint(ks[5], (E,), 0, Nt)
    adj_tt = jnp.zeros((Nt, Nt), jnp.float32).at[dst_tt, src_tt].set(1.0)
    adj_ct = jnp.zeros((Nt, Nc), jnp.float32).at[dst_ct, src_ct].set(1.0)

    def lin(k, o, i):
        s = 1.0 / np.sqrt(i)
        return jax.random.uniform(k, (o, i), jnp.float32, -s, s)

    def vec(k, n, s):
        return jax.random.uniform(k, (n,), jnp.float32, -s, s)

    p = {
        # HeteroDictLinear pre-transform (per node type)
        "w_pre_t": lin(ks[6], H, Ft), "b_pre_t": vec(ks[7], H, 0.1),
        "w_pre_c": lin(ks[8], H, Fc), "b_pre_c": vec(ks[9], H, 0.1),
        # DirGATConv on ('target','to','target'): GATConv src->dst and dst->src
        "w_s2d": lin(ks[10], H, H), "a_src_s2d": vec(ks[11], H, 0.5),
        "a_dst_s2d": vec(ks[12], H, 0.5), "b_s2d": vec(ks[13], H, 0.1),
        "w_d2s": lin(ks[14], H, H), "a_src_d2s": vec(ks[15], H, 0.5),
        "a_dst_d2s": vec(ks[16], H, 0.5), "b_d2s": vec(ks[17], H, 0.1),
        # GATConv on ('context','to','target') (bipartite, add_self_loops=False)
        "w_ct_src": lin(ks[18], H, H), "w_ct_dst": lin(ks[19], H, H),
        "a_src_ct": vec(ks[20], H, 0.5), "a_dst_ct": vec(ks[21], H, 0.5),
        "b_ct": vec(ks[22], H, 0.1),
        # final Linear(H, H)
        "w_fin": lin(ks[23], H, H), "b_fin": vec(ks[24], H, 0.1),
    }

    out = hetero_forecast_gat_forward(x_t, x_c, adj_tt, adj_ct, p, alpha)
    out = jax.block_until_ready(out)

    ref = forward_ref(x_t, x_c, adj_tt, adj_ct, p, alpha)
    np.testing.assert_allclose(np.asarray(out), np.asarray(ref),
                               rtol=2e-2, atol=2e-2)
    print("KERNEL_OK")
</pallas_src>

<mosaic_0001>
module attributes {stable_mosaic.version = 11 : i64} {
  func.func @kernel(%arg0: memref<16x34xf32, #tpu.memory_space<vmem>>, %arg1: memref<34x16xf32, #tpu.memory_space<vmem>>, %arg2: memref<34x32xf32, #tpu.memory_space<vmem>>, %arg3: memref<32x34xf32, #tpu.memory_space<vmem>>, %arg4: memref<32x104xf32, #tpu.memory_space<vmem>>, %arg5: memref<8x32xf32, #tpu.memory_space<vmem>>, %arg6: memref<2x8x8xf32, #tpu.memory_space<vmem>>, %arg7: memref<8x8xf32, #tpu.memory_space<vmem>>, %arg8: memref<32x32xf32, #tpu.memory_space<vmem>>, %arg9: memref<2x32xf32, #tpu.memory_space<vmem>>, %arg10: memref<8x32xf32, #tpu.memory_space<vmem>>) attributes {dimension_semantics = [], scalar_prefetch = 0 : i64, scratch_operands = 0 : i64, tpu.core_type = #tpu.core_type<tc>} {
    %c0 = arith.constant 0 : index
    %c0_0 = arith.constant 0 : index
    %0 = vector.load %arg0[%c0, %c0_0] : memref<16x34xf32, #tpu.memory_space<vmem>>, vector<16x34xf32>
    %c0_1 = arith.constant 0 : index
    %c0_2 = arith.constant 0 : index
    %1 = vector.load %arg2[%c0_1, %c0_2] : memref<34x32xf32, #tpu.memory_space<vmem>>, vector<34x32xf32>
    %cst = arith.constant dense<0.000000e+00> : vector<16x32xf32>
    %2 = tpu.matmul %0, %1, %cst {dimension_numbers = #tpu.dot_dimension_numbers<[1], [0], [0], [1], [0, 0, 1, 1], [], []>} : vector<16x34xf32>, vector<34x32xf32>, vector<16x32xf32> -> vector<16x32xf32>
    %cst_3 = arith.constant 0.000000e+00 : f32
    %3 = vector.broadcast %cst_3 : f32 to vector<16x32xf32>
    %4 = arith.maximumf %2, %3 : vector<16x32xf32>
    %c0_4 = arith.constant 0 : index
    %c0_5 = arith.constant 0 : index
    %5 = vector.load %arg3[%c0_4, %c0_5] : memref<32x34xf32, #tpu.memory_space<vmem>>, vector<32x34xf32>
    %c0_6 = arith.constant 0 : index
    %c0_7 = arith.constant 0 : index
    %6 = vector.load %arg1[%c0_6, %c0_7] : memref<34x16xf32, #tpu.memory_space<vmem>>, vector<34x16xf32>
    %cst_8 = arith.constant dense<0.000000e+00> : vector<32x16xf32>
    %7 = tpu.matmul %5, %6, %cst_8 {dimension_numbers = #tpu.dot_dimension_numbers<[1], [0], [0], [1], [0, 0, 1, 1], [], []>} : vector<32x34xf32>, vector<34x16xf32>, vector<32x16xf32> -> vector<32x16xf32>
    %cst_9 = arith.constant 0.000000e+00 : f32
    %8 = vector.broadcast %cst_9 : f32 to vector<32x16xf32>
    %9 = arith.maximumf %7, %8 : vector<32x16xf32>
    %c0_10 = arith.constant 0 : index
    %c0_11 = arith.constant 0 : index
    %10 = vector.load %arg4[%c0_10, %c0_11] : memref<32x104xf32, #tpu.memory_space<vmem>>, vector<32x104xf32>
    %cst_12 = arith.constant dense<0.000000e+00> : vector<16x104xf32>
    %11 = tpu.matmul %4, %10, %cst_12 {dimension_numbers = #tpu.dot_dimension_numbers<[1], [0], [0], [1], [0, 0, 1, 1], [], []>} : vector<16x32xf32>, vector<32x104xf32>, vector<16x104xf32> -> vector<16x104xf32>
    %12 = vector.extract_strided_slice %4 {offsets = [0, 0], sizes = [8, 32], strides = [1, 1]} : vector<16x32xf32> to vector<8x32xf32>
    %13 = vector.extract_strided_slice %11 {offsets = [0, 0], sizes = [8, 32], strides = [1, 1]} : vector<16x104xf32> to vector<8x32xf32>
    %14 = vector.extract_strided_slice %11 {offsets = [0, 32], sizes = [8, 32], strides = [1, 1]} : vector<16x104xf32> to vector<8x32xf32>
    %15 = vector.extract_strided_slice %11 {offsets = [8, 64], sizes = [8, 32], strides = [1, 1]} : vector<16x104xf32> to vector<8x32xf32>
    %16 = vector.extract_strided_slice %11 {offsets = [0, 96], sizes = [8, 1], strides = [1, 1]} : vector<16x104xf32> to vector<8x1xf32>
    %17 = vector.extract_strided_slice %11 {offsets = [0, 97], sizes = [8, 1], strides = [1, 1]} : vector<16x104xf32> to vector<8x1xf32>
    %18 = vector.extract_strided_slice %11 {offsets = [0, 98], sizes = [8, 1], strides = [1, 1]} : vector<16x104xf32> to vector<8x1xf32>
    %c0_13 = arith.constant 0 : index
    %c0_14 = arith.constant 0 : index
    %19 = vector.load %arg5[%c0_13, %c0_14] : memref<8x32xf32, #tpu.memory_space<vmem>>, vector<8x32xf32>
    %cst_15 = arith.constant dense<0.000000e+00> : vector<8x16xf32>
    %20 = tpu.matmul %19, %9, %cst_15 {dimension_numbers = #tpu.dot_dimension_numbers<[1], [0], [0], [1], [0, 0, 1, 1], [], []>} : vector<8x32xf32>, vector<32x16xf32>, vector<8x16xf32> -> vector<8x16xf32>
    %21 = vector.extract_strided_slice %20 {offsets = [0, 0], sizes = [1, 8], strides = [1, 1]} : vector<8x16xf32> to vector<1x8xf32>
    %22 = vector.extract_strided_slice %20 {offsets = [1, 0], sizes = [1, 8], strides = [1, 1]} : vector<8x16xf32> to vector<1x8xf32>
    %23 = vector.extract_strided_slice %20 {offsets = [2, 8], sizes = [1, 8], strides = [1, 1]} : vector<8x16xf32> to vector<1x8xf32>
    %24 = vector.broadcast %16 : vector<8x1xf32> to vector<8x8xf32>
    %25 = vector.broadcast %21 : vector<1x8xf32> to vector<8x8xf32>
    %26 = arith.addf %24, %25 : vector<8x8xf32>
    %c0_16 = arith.constant 0 : index
    %c0_17 = arith.constant 0 : index
    %c0_18 = arith.constant 0 : index
    %27 = vector.load %arg6[%c0_16, %c0_17, %c0_18] : memref<2x8x8xf32, #tpu.memory_space<vmem>>, vector<1x8x8xf32>
    %28 = vector.shape_cast %27 : vector<1x8x8xf32> to vector<8x8xf32>
    %cst_19 = arith.constant 2.000000e-01 : f32
    %29 = vector.broadcast %cst_19 : f32 to vector<8x8xf32>
    %30 = arith.mulf %29, %26 : vector<8x8xf32>
    %31 = arith.maximumf %26, %30 : vector<8x8xf32>
    %cst_20 = arith.constant 0.000000e+00 : f32
    %32 = vector.broadcast %cst_20 : f32 to vector<8x8xf32>
    %33 = arith.cmpf ogt, %28, %32 : vector<8x8xf32>
    %cst_21 = arith.constant -1.000000e+30 : f32
    %34 = vector.broadcast %cst_21 : f32 to vector<8x8xf32>
    %35 = arith.select %33, %31, %34 : vector<8x8xi1>, vector<8x8xf32>
    %cst_22 = arith.constant dense<0xFF800000> : vector<8xf32>
    %36 = vector.multi_reduction <maximumf>, %35, %cst_22 [1] : vector<8x8xf32> to vector<8xf32>
    %37 = vector.shape_cast %36 : vector<8xf32> to vector<8x1xf32>
    %cst_23 = arith.constant 0.000000e+00 : f32
    %38 = vector.broadcast %cst_23 : f32 to vector<8x8xf32>
    %39 = arith.cmpf ogt, %28, %38 : vector<8x8xf32>
    %40 = vector.broadcast %37 : vector<8x1xf32> to vector<8x8xf32>
    %41 = arith.subf %35, %40 : vector<8x8xf32>
    %42 = math.exp %41 : vector<8x8xf32>
    %cst_24 = arith.constant 0.000000e+00 : f32
    %43 = vector.broadcast %cst_24 : f32 to vector<8x8xf32>
    %44 = arith.select %39, %42, %43 : vector<8x8xi1>, vector<8x8xf32>
    %cst_25 = arith.constant dense<0.000000e+00> : vector<8xf32>
    %45 = vector.multi_reduction <add>, %44, %cst_25 [1] : vector<8x8xf32> to vector<8xf32>
    %46 = vector.shape_cast %45 : vector<8xf32> to vector<8x1xf32>
    %cst_26 = arith.constant 9.99999968E-21 : f32
    %47 = vector.broadcast %cst_26 : f32 to vector<8x1xf32>
    %48 = arith.maximumf %46, %47 : vector<8x1xf32>
    %49 = tpu.reciprocal %48 {approx = true} : vector<8x1xf32> -> vector<8x1xf32>
    %50 = vector.broadcast %49 : vector<8x1xf32> to vector<8x8xf32>
    %51 = arith.mulf %44, %50 : vector<8x8xf32>
    %cst_27 = arith.constant 2.500000e-01 : f32
    %52 = vector.broadcast %cst_27 : f32 to vector<8x8xf32>
    %53 = arith.mulf %51, %52 : vector<8x8xf32>
    %54 = vector.broadcast %17 : vector<8x1xf32> to vector<8x8xf32>
    %55 = vector.broadcast %22 : vector<1x8xf32> to vector<8x8xf32>
    %56 = arith.addf %54, %55 : vector<8x8xf32>
    %c1 = arith.constant 1 : index
    %c0_28 = arith.constant 0 : index
    %c0_29 = arith.constant 0 : index
    %57 = vector.load %arg6[%c1, %c0_28, %c0_29] : memref<2x8x8xf32, #tpu.memory_space<vmem>>, vector<1x8x8xf32>
    %58 = vector.shape_cast %57 : vector<1x8x8xf32> to vector<8x8xf32>
    %cst_30 = arith.constant 2.000000e-01 : f32
    %59 = vector.broadcast %cst_30 : f32 to vector<8x8xf32>
    %60 = arith.mulf %59, %56 : vector<8x8xf32>
    %61 = arith.maximumf %56, %60 : vector<8x8xf32>
    %cst_31 = arith.constant 0.000000e+00 : f32
    %62 = vector.broadcast %cst_31 : f32 to vector<8x8xf32>
    %63 = arith.cmpf ogt, %58, %62 : vector<8x8xf32>
    %cst_32 = arith.constant -1.000000e+30 : f32
    %64 = vector.broadcast %cst_32 : f32 to vector<8x8xf32>
    %65 = arith.select %63, %61, %64 : vector<8x8xi1>, vector<8x8xf32>
    %cst_33 = arith.constant dense<0xFF800000> : vector<8xf32>
    %66 = vector.multi_reduction <maximumf>, %65, %cst_33 [1] : vector<8x8xf32> to vector<8xf32>
    %67 = vector.shape_cast %66 : vector<8xf32> to vector<8x1xf32>
    %cst_34 = arith.constant 0.000000e+00 : f32
    %68 = vector.broadcast %cst_34 : f32 to vector<8x8xf32>
    %69 = arith.cmpf ogt, %58, %68 : vector<8x8xf32>
    %70 = vector.broadcast %67 : vector<8x1xf32> to vector<8x8xf32>
    %71 = arith.subf %65, %70 : vector<8x8xf32>
    %72 = math.exp %71 : vector<8x8xf32>
    %cst_35 = arith.constant 0.000000e+00 : f32
    %73 = vector.broadcast %cst_35 : f32 to vector<8x8xf32>
    %74 = arith.select %69, %72, %73 : vector<8x8xi1>, vector<8x8xf32>
    %cst_36 = arith.constant dense<0.000000e+00> : vector<8xf32>
    %75 = vector.multi_reduction <add>, %74, %cst_36 [1] : vector<8x8xf32> to vector<8xf32>
    %76 = vector.shape_cast %75 : vector<8xf32> to vector<8x1xf32>
    %cst_37 = arith.constant 9.99999968E-21 : f32
    %77 = vector.broadcast %cst_37 : f32 to vector<8x1xf32>
    %78 = arith.maximumf %76, %77 : vector<8x1xf32>
    %79 = tpu.reciprocal %78 {approx = true} : vector<8x1xf32> -> vector<8x1xf32>
    %80 = vector.broadcast %79 : vector<8x1xf32> to vector<8x8xf32>
    %81 = arith.mulf %74, %80 : vector<8x8xf32>
    %cst_38 = arith.constant 2.500000e-01 : f32
    %82 = vector.broadcast %cst_38 : f32 to vector<8x8xf32>
    %83 = arith.mulf %81, %82 : vector<8x8xf32>
    %84 = vector.broadcast %18 : vector<8x1xf32> to vector<8x8xf32>
    %85 = vector.broadcast %23 : vector<1x8xf32> to vector<8x8xf32>
    %86 = arith.addf %84, %85 : vector<8x8xf32>
    %c0_39 = arith.constant 0 : index
    %c0_40 = arith.constant 0 : index
    %87 = vector.load %arg7[%c0_39, %c0_40] : memref<8x8xf32, #tpu.memory_space<vmem>>, vector<8x8xf32>
    %cst_41 = arith.constant 2.000000e-01 : f32
    %88 = vector.broadcast %cst_41 : f32 to vector<8x8xf32>
    %89 = arith.mulf %88, %86 : vector<8x8xf32>
    %90 = arith.maximumf %86, %89 : vector<8x8xf32>
    %cst_42 = arith.constant 0.000000e+00 : f32
    %91 = vector.broadcast %cst_42 : f32 to vector<8x8xf32>
    %92 = arith.cmpf ogt, %87, %91 : vector<8x8xf32>
    %cst_43 = arith.constant -1.000000e+30 : f32
    %93 = vector.broadcast %cst_43 : f32 to vector<8x8xf32>
    %94 = arith.select %92, %90, %93 : vector<8x8xi1>, vector<8x8xf32>
    %cst_44 = arith.constant dense<0xFF800000> : vector<8xf32>
    %95 = vector.multi_reduction <maximumf>, %94, %cst_44 [1] : vector<8x8xf32> to vector<8xf32>
    %96 = vector.shape_cast %95 : vector<8xf32> to vector<8x1xf32>
    %cst_45 = arith.constant 0.000000e+00 : f32
    %97 = vector.broadcast %cst_45 : f32 to vector<8x8xf32>
    %98 = arith.cmpf ogt, %87, %97 : vector<8x8xf32>
    %99 = vector.broadcast %96 : vector<8x1xf32> to vector<8x8xf32>
    %100 = arith.subf %94, %99 : vector<8x8xf32>
    %101 = math.exp %100 : vector<8x8xf32>
    %cst_46 = arith.constant 0.000000e+00 : f32
    %102 = vector.broadcast %cst_46 : f32 to vector<8x8xf32>
    %103 = arith.select %98, %101, %102 : vector<8x8xi1>, vector<8x8xf32>
    %cst_47 = arith.constant dense<0.000000e+00> : vector<8xf32>
    %104 = vector.multi_reduction <add>, %103, %cst_47 [1] : vector<8x8xf32> to vector<8xf32>
    %105 = vector.shape_cast %104 : vector<8xf32> to vector<8x1xf32>
    %cst_48 = arith.constant 9.99999968E-21 : f32
    %106 = vector.broadcast %cst_48 : f32 to vector<8x1xf32>
    %107 = arith.maximumf %105, %106 : vector<8x1xf32>
    %108 = tpu.reciprocal %107 {approx = true} : vector<8x1xf32> -> vector<8x1xf32>
    %109 = vector.broadcast %108 : vector<8x1xf32> to vector<8x8xf32>
    %110 = arith.mulf %103, %109 : vector<8x8xf32>
    %cst_49 = arith.constant 5.000000e-01 : f32
    %111 = vector.broadcast %cst_49 : f32 to vector<8x8xf32>
    %112 = arith.mulf %110, %111 : vector<8x8xf32>
    %cst_50 = arith.constant dense<0.000000e+00> : vector<8x32xf32>
    %113 = tpu.matmul %53, %13, %cst_50 {dimension_numbers = #tpu.dot_dimension_numbers<[1], [0], [0], [1], [0, 0, 1, 1], [], []>} : vector<8x8xf32>, vector<8x32xf32>, vector<8x32xf32> -> vector<8x32xf32>
    %cst_51 = arith.constant dense<0.000000e+00> : vector<8x32xf32>
    %114 = tpu.matmul %83, %14, %cst_51 {dimension_numbers = #tpu.dot_dimension_numbers<[1], [0], [0], [1], [0, 0, 1, 1], [], []>} : vector<8x8xf32>, vector<8x32xf32>, vector<8x32xf32> -> vector<8x32xf32>
    %115 = arith.addf %113, %114 : vector<8x32xf32>
    %cst_52 = arith.constant dense<0.000000e+00> : vector<8x32xf32>
    %116 = tpu.matmul %112, %15, %cst_52 {dimension_numbers = #tpu.dot_dimension_numbers<[1], [0], [0], [1], [0, 0, 1, 1], [], []>} : vector<8x8xf32>, vector<8x32xf32>, vector<8x32xf32> -> vector<8x32xf32>
    %117 = arith.addf %115, %116 : vector<8x32xf32>
    %c0_53 = arith.constant 0 : index
    %c0_54 = arith.constant 0 : index
    %118 = vector.load %arg9[%c0_53, %c0_54] : memref<2x32xf32, #tpu.memory_space<vmem>>, vector<1x32xf32>
    %119 = vector.broadcast %118 : vector<1x32xf32> to vector<8x32xf32>
    %120 = arith.addf %117, %119 : vector<8x32xf32>
    %121 = arith.addf %120, %12 : vector<8x32xf32>
    %cst_55 = arith.constant 0.000000e+00 : f32
    %122 = vector.broadcast %cst_55 : f32 to vector<8x32xf32>
    %123 = arith.maximumf %121, %122 : vector<8x32xf32>
    %c0_56 = arith.constant 0 : index
    %c0_57 = arith.constant 0 : index
    %124 = vector.load %arg8[%c0_56, %c0_57] : memref<32x32xf32, #tpu.memory_space<vmem>>, vector<32x32xf32>
    %cst_58 = arith.constant dense<0.000000e+00> : vector<8x32xf32>
    %125 = tpu.matmul %123, %124, %cst_58 {dimension_numbers = #tpu.dot_dimension_numbers<[1], [0], [0], [1], [0, 0, 1, 1], [], []>} : vector<8x32xf32>, vector<32x32xf32>, vector<8x32xf32> -> vector<8x32xf32>
    %c1_59 = arith.constant 1 : index
    %c0_60 = arith.constant 0 : index
    %126 = vector.load %arg9[%c1_59, %c0_60] : memref<2x32xf32, #tpu.memory_space<vmem>>, vector<1x32xf32>
    %127 = vector.broadcast %126 : vector<1x32xf32> to vector<8x32xf32>
    %128 = arith.addf %125, %127 : vector<8x32xf32>
    %c0_61 = arith.constant 0 : index
    %c0_62 = arith.constant 0 : index
    %129 = vector.load %arg10[%c0_61, %c0_62] : memref<8x32xf32, #tpu.memory_space<vmem>>, vector<8x32xf32>
    tpu.vector_store %arg10[%c0_61, %c0_62], %128 {strides = array<i32>} : memref<8x32xf32, #tpu.memory_space<vmem>>, vector<8x32xf32>,
    return
  }
}

</mosaic_0001>

<bundles_post_ra>
// kernel: tpu_custom_call.1
= control target key start
LH: loop header
LB: loop body
LE: loop exit
PB: predicated region body
PF: predicated region fallthrough
CT: control target
= control target key end

     0   :  { %15 = vsyncpa [#allocation3], 0  ;;  %s1369_s0 = inlined_call_operand.hbm [shape: f32[16,34], index: 0, kind: input, shape index: {}]   ;;  %s1370_s1 = inlined_call_operand.vmem [shape: f32[34,16], index: 1, kind: input, shape index: {}]   ;;  %s1371_s2 = inlined_call_operand.vmem [shape: f32[34,32], index: 2, kind: input, shape index: {}]   ;;  %s1372_s3 = inlined_call_operand.vmem [shape: f32[32,34], index: 3, kind: input, shape index: {}]   ;;  %s1373_s4 = inlined_call_operand.vmem [shape: f32[32,104], index: 4, kind: input, shape index: {}]   ;;  %s1374_s5 = inlined_call_operand.hbm [shape: f32[8,32], index: 5, kind: input, shape index: {}]   ;;  %s1375_s6 = inlined_call_operand.vmem [shape: f32[2,8,8], index: 6, kind: input, shape index: {}]   ;;  %s1376_s7 = inlined_call_operand.vmem [shape: f32[8,8], index: 7, kind: input, shape index: {}]   ;;  %s1377_s8 = inlined_call_operand.vmem [shape: f32[32,32], index: 8, kind: input, shape index: {}]   ;;  %s1378_s9 = inlined_call_operand.vmem [shape: f32[2,32], index: 9, kind: input, shape index: {}]   ;;  %s1379_s10 = inlined_call_operand.hbm [shape: f32[8,32], index: 10, kind: output, shape index: {}]  }
   0x1   :  { %16 = vsyncpa [#allocation6], 0 }
   0x2   :  { %17 = vsyncpa [#allocation4], 0  ;;  %s1126_s13 = smov [#allocation2]   ;;  %s1054_s17 = scalar_lea.hbm %s1369_s0, 256 }
   0x3   :  { %s23_s14 = sshll.u32 %s1126_s13, 4  ;;  %p1055_p0 = scmp.ne.s32.totalorder %s1369_s0, %s1054_s17  ;;  %s24_s14 = int_to_ptr.vmem [resolvable:$true] %s23_s14 }
   0x4   :  { %p1058_p1 = scmp.lt.u32.totalorder %s1054_s17, %s1369_s0 }
   0x6   :  { %p1060_p2 = pnand %p1058_p1, %p1055_p0 }
   0x8   :  { %1063 = shalt.err (!%p1060_p2)
}
   0x9   :  { %s1064_s22 = scalar_lea.vmem %s24_s14, 256  ;;  %p1069_p4 = scmp.lt.s32.totalorder %s24_s14, %s24_s14 }
   0xa   :  { %p1065_p3 = scmp.ne.s32.totalorder %s24_s14, %s1064_s22  ;;  %p1070_p5 = scmp.lt.s32.totalorder %s1064_s22, %s1064_s22 }
   0xc   :  { %p1071_p6 = por %p1070_p5, %p1069_p4 }
   0xe   :  { %p1072_p7 = pnand %p1071_p6, %p1065_p3 }
  0x10   :  { %1075 = shalt.err (!%p1072_p7)
}
  0x11   :  { %s1127_s23 = smov 128   ;;  %s1128_s24 = smov 8  }
  0x12   :  { %29 = dma.hbm_to_vmem [thread:$0]  %s1369_s0, 256, %s24_s14, [#allocation3], %s1127_s23, %s1127_s23, %s1128_s24  }
  0x13   :  { %s1129_s27 = smov [#allocation5]   ;;  %s1076_s11 = scalar_lea.hbm %s1374_s5, 128 }
  0x14   :  { %s44_s28 = sshll.u32 %s1129_s27, 4  ;;  %p1077_p8 = scmp.ne.s32.totalorder %s1374_s5, %s1076_s11  ;;  %s45_s28 = int_to_ptr.vmem [resolvable:$true] %s44_s28 }
  0x15   :  { %p1080_p9 = scmp.lt.u32.totalorder %s1076_s11, %s1374_s5 }
  0x17   :  { %p1082_p10 = pnand %p1080_p9, %p1077_p8 }
  0x19   :  { %1085 = shalt.err (!%p1082_p10)
}
  0x1a   :  { %s1086_s17 = scalar_lea.vmem %s45_s28, 128  ;;  %p1091_p12 = scmp.lt.s32.totalorder %s45_s28, %s45_s28 }
  0x1b   :  { %p1087_p11 = scmp.ne.s32.totalorder %s45_s28, %s1086_s17  ;;  %p1092_p13 = scmp.lt.s32.totalorder %s1086_s17, %s1086_s17 }
  0x1d   :  { %p1093_p0 = por %p1092_p13, %p1091_p12 }
  0x1f   :  { %p1094_p1 = pnand %p1093_p0, %p1087_p11 }
  0x21   :  { %1097 = shalt.err (!%p1094_p1)
}
  0x22   :  { %47 = dma.hbm_to_vmem [thread:$0]  %s1374_s5, 128, %s45_s28, [#allocation6]  }
  0x23   :  { %1120 = dma.done.wait [#allocation3], 256  }
  0x24   :  { %1121 = vsyncadd [#allocation3], 4294967040 }
  0x25   :  { %1122 = dma.done.wait [#allocation6], 128  }
  0x26   :  { %1123 = vsyncadd [#allocation6], 4294967168  ;;  %vm69_vm0 = vcmask 277504   ;;  %v64_v0 = vld [vmem:[%s1371_s2] sm:$0xff]  ;;  %v65_v1 = vld [vmem:[%s1371_s2 + $0x8] sm:$0xff]  ;;  %vm76_vm1 = vcmask 1041408   ;;  %v435_v50 = vlaneseq }
  0x27   :  { %v66_v2 = vld [vmem:[%s1371_s2 + $0x10] sm:$0xff]  ;;  %v988_v3 = vpack.c.bf16 %v65_v1, %v64_v0  ;;  %v67_v4 = vld [vmem:[%s1371_s2 + $0x18] sm:$0xff]  ;;  %v62_v5 = vld [vmem:[#allocation2] sm:$0xff]  ;;  %v1130_v26 = vmov 0.0|0.0   ;;  %vm1131_vm2 = vmmov 0   ;;  %v1132_v27 = vmov 0.0  }
  0x28   :  { %v992_v6 = vpack.c.bf16 %v67_v4, %v66_v2  ;;  %921 = vmatprep.mubr.msk.f32.mxu0 %vm69_vm0, %v62_v5  ;;  %v161_v7 = vld [vmem:[%s1370_s1] sm:$0xff]  ;;  %v162_v8 = vld [vmem:[%s1370_s1 + $0x8] sm:$0xff]  ;;  %v163_v10 = vld [vmem:[%s1370_s1 + $0x10] sm:$0xff]  ;;  %vm274_vm3 = vcmask 261120   ;;  %v1133_v43 = vmov 98   ;;  %v1134_v44 = vmov 96  }
  0x29   :  { %989 = vmatprep.subr.bf16.mxu0 %v988_v3  ;;  %v996_v9 = vpack.c.bf16 %v162_v8, %v161_v7  ;;  %v164_v11 = vld [vmem:[%s1370_s1 + $0x18] sm:$0xff]  ;;  %v157_v13 = vld [vmem:[%s1372_s3] sm:$0xff]  ;;  %v271_v16 = vld [vmem:[%s1373_s4 + $0x8] sm:$0xff]  ;;  %1038 = vset.pattern.permute.xlu0 %v1133_v43  ;;  %v1135_v47 = vmov 97   ;;  %v436_v51 = vshrl.u32 %v435_v50, 7  ;;  %vm445_vm5 = vcmask 64512  }
  0x2a   :  { %991 = vmatpush3.bf16.msra.mxu0 %v988_v3  ;;  %v1000_v12 = vpack.c.bf16 %v164_v11, %v163_v10  ;;  %v68_v14 = vld [vmem:[%s1371_s2 + $0x20] sm:$0x3]  ;;  %934 = vmatprep.mubr.msk.f32.mxu1 %vm69_vm0, %v157_v13  ;;  %v63_v19 = vld [vmem:[#allocation2 + $0x8] sm:$0xff]  ;;  %v159_v21 = vld [vmem:[%s1372_s3 + $0x10] sm:$0xff]  ;;  %s1136_s29 = smov 120   ;;  %s1139_s23 = smov [#allocation7]  }
  0x2b   :  { %993 = vmatprep.subr.bf16.mxu0 %v992_v6  ;;  %997 = vmatprep.subr.bf16.mxu1 %v996_v9  ;;  %v270_v15 = vld [vmem:[%s1373_s4] sm:$0xff]  ;;  %v158_v20 = vld [vmem:[%s1372_s3 + $0x8] sm:$0xff]  ;;  %v160_v22 = vld [vmem:[%s1372_s3 + $0x18] sm:$0xff]  ;;  %v437_v52 = vsub.s32 0, %v436_v51  ;;  %v495_v53 = vsub.s32 2, %v436_v51  ;;  %v466_v3 = vsub.s32 1, %v436_v51 }
  0x2c   :  { %999 = vmatpush3.bf16.msra.mxu1 %v996_v9  ;;  %v165_v17 = vld [vmem:[%s1370_s1 + $0x20] sm:$0x3]  ;;  %v1004_v18 = vpack.c.bf16 %v271_v16, %v270_v15  ;;  %v272_v23 = vld [vmem:[%s1373_s4 + $0x10] sm:$0xff]  ;;  %v273_v24 = vld [vmem:[%s1373_s4 + $0x18] sm:$0xff]  ;;  %1040 = vset.pattern.permute.xlu1 %v1134_v44  ;;  %s845_s24 = sshll.u32 %s1139_s23, 4  ;;  %s846_s24 = int_to_ptr.vmem [resolvable:$true] %s845_s24 }
  0x2d   :  { %1001 = vmatprep.subr.bf16.mxu1 %v1000_v12  ;;  %v1008_v25 = vpack.c.bf16 %v273_v24, %v272_v23  ;;  %v356_v42 = vld [vmem:[#allocation5] sm:$0xff]  ;;  %v440_v60 = vld [vmem:[%s1375_s6] sm:$0xff]  ;;  %v866_v8 = vld [vmem:[%s1375_s6 + $0x8] sm:$0xff]  ;;  %s1137_s6 = smov 96   ;;  %s1098_s1 = scalar_lea.vmem %s846_s24, 128 }
  0x2e   :  { %995 = vmatpush3.bf16.msra.mxu0 %v992_v6  ;;  %vm443_vm4 = vcmp.gt.f32.partialorder %v440_v60, 0.0  ;;  %vm473_vm6 = vcmp.gt.f32.partialorder %v866_v8, 0.0  ;;  %p1099_p2 = scmp.ne.s32.totalorder %s846_s24, %s1098_s1  ;;  %p1103_p3 = scmp.lt.s32.totalorder %s846_s24, %s846_s24 }
  0x2f   :  { %919 = vmatprep.subr.msk.mxu0 %vm76_vm1, %v68_v14  ;;  %p1104_p4 = scmp.lt.s32.totalorder %s1098_s1, %s1098_s1 }
  0x30   :  { %1003 = vmatpush3.bf16.msra.mxu1 %v1000_v12  ;;  %v498_v12 = vld [vmem:[%s1376_s7] sm:$0xff]  ;;  %s1138_s7 = smov 64  }
  0x31   :  { %932 = vmatprep.subr.msk.mxu1 %vm76_vm1, %v165_v17  ;;  %vm501_vm7 = vcmp.gt.f32.partialorder %v498_v12, 0.0  ;;  %p1105_p5 = por %p1104_p4, %p1103_p3 }
  0x32   :  { %920 = vmatpush3.msk.msra.mxu0 %vm76_vm1, %v68_v14 }
  0x33   :  { %922 = vmatmul.mubr.msk.f32.vlgmr.msra.gmra.mrb[0].mxu0 %vm69_vm0, %v63_v19  ;;  %1005 = vmatprep.subr.bf16.mxu0 %v1004_v18  ;;  %p1106_p6 = pnand %p1105_p5, %p1099_p2 }
  0x34   :  { %933 = vmatpush3.msk.msra.mxu1 %vm76_vm1, %v165_v17  ;;  %1007 = vmatpush3.bf16.msra.mxu0 %v1004_v18 }
  0x35   :  { %935 = vmatmul.mubr.msk.f32.vlgmr.msra.gmra.mrb[0].mxu1 %vm69_vm0, %v158_v20  ;;  %1009 = vmatprep.subr.bf16.mxu0 %v1008_v25 }
  0x36   :  { %937 = vmatprep.mubr.msk.f32.mxu1 %vm69_vm0, %v159_v21  ;;  %1012 = vmatprep.subr.bf16.mxu1 %v1130_v26 }
  0x38   :  { %1011 = vmatpush3.bf16.msra.mxu0 %v1008_v25 }
  0x39   :  { %938 = vmatmul.mubr.msk.f32.gmra.mrb[2].mxu1 %vm69_vm0, %v160_v22  ;;  %962 = vmatprep.subr.mxu0 %v1132_v27 }
  0x3a   :  { %959 = vmatprep.mubr.msk.f32.mxu1 %vm1131_vm2, %v1132_v27 }
 0x106   :  { %v923_v28 = vpop.f32.mrb[0].mxu0 }
 0x107   :  { %v1287_v29 = vpop.f32.mrb[1].mxu0  ;;  %v156_v32 = vmax.f32 %v923_v28, 0.0 }
 0x108   :  { %v155_v30 = vmax.f32 %v1287_v29, 0.0  ;;  %v936_v31 = vpop.f32.mrb[0].mxu1 }
 0x109   :  { %v267_v33 = vmax.f32 %v936_v31, 0.0  ;;  %v247_v34 = vpop.f32.mrb[1].mxu1 }
 0x10a   :  { %948 = vmatprep.mubr.msk.f32.mxu0 %vm274_vm3, %v155_v30  ;;  %v266_v35 = vmax.f32 %v247_v34, 0.0 }
 0x10b   :  { %949 = vmatmul.mubr.msk.f32.vlgmr.msra.gmra.mrb[2].mxu0 %vm274_vm3, %v156_v32 }
 0x10c   :  { %v1013_v36 = vpack.c.bf16 %v267_v33, %v266_v35  ;;  %v939_v37 = vpop.f32.mrb[2].mxu1  ;;  %964 = vmatprep.mubr.msk.f32.mxu0 %vm1131_vm2, %v1132_v27 }
 0x10d   :  { %v269_v38 = vmax.f32 %v939_v37, 0.0  ;;  %v257_v39 = vpop.f32.mrb[3].mxu1 }
 0x10e   :  { %v268_v40 = vmax.f32 %v257_v39, 0.0  ;;  %1014 = vmatpush3.bf16.msra.mxu1 %v1013_v36 }
 0x10f   :  { %1015 = vmatprep.subr.bf16.mxu1 %v1130_v26 }
 0x110   :  { %v1016_v41 = vpack.c.bf16 %v269_v38, %v268_v40 }
 0x112   :  { %1017 = vmatpush3.bf16.msra.mxu1 %v1016_v41 }
 0x113   :  { %967 = vmatprep.subr.mxu1 %v1132_v27 }
 0x115   :  { %960 = vmatmul.mubr.msk.f32.vlgmr.msra.gmra.mrb[4].mxu1 %vm274_vm3, %v356_v42 }
 0x116   :  { %969 = vmatprep.mubr.msk.f32.mxu1 %vm1131_vm2, %v1132_v27 }
 0x1de   :  { %v1301_v45 = vpop.f32.mrb[2].mxu0 }
 0x1df   :  { %v347_v46 = vpop.f32.mrb[3].mxu0 }
 0x1e0   :  { %432 = vperm.xlu1 %1040, %v347_v46   ;;  %490 = vperm.xlu0 %1038, %v347_v46  }
 0x1e1   :  { %968 = vmatpush3.msra.mxu1 %v347_v46 }
 0x1e2   :  { %1018 = vmatprep.subr.bf16.mxu1 %v1130_v26 }
 0x1e4   :  { %1039 = vset.pattern.permute.xlu0 %v1135_v47 }
 0x1e5   :  { %461 = vperm.xlu0 %1039, %v347_v46  }
 0x1e8   :  { %v426_v48 = vpop.f32.mrb[4].mxu1 }
 0x1e9   :  { %v961_v49 = vpop.f32.mrb[5].mxu1  ;;  %1041 = vset.pattern.permute.xlu0 %v1133_v43  ;;  %v438_v54 = vrot.slane %v426_v48, %v437_v52  ;;  %v496_v55 = vrot.slane %v426_v48, %v495_v53  ;;  %v467_v5 = vrot.slane %v426_v48, %v466_v3 }
 0x25f   :  { %v433_v56 = vpop.permute.xlu1 %432  ;;  %v491_v57 = vpop.permute.xlu0 %490 }
 0x260   :  { %v439_v58 = vadd.f32 %v438_v54, %v433_v56  ;;  %v497_v59 = vadd.f32 %v496_v55, %v491_v57  ;;  %v756_v55 = vld [vmem:[%s1377_s8] sm:$0xff]  ;;  %v757_v56 = vld [vmem:[%s1377_s8 + $0x8] sm:$0xff] }
 0x261   :  { %v1019_v57 = vpack.c.bf16 %v757_v56, %v756_v55 }
 0x262   :  { %v441_v61 = vmul.f32 0.2, %v439_v58  ;;  %v499_v62 = vmul.f32 0.2, %v497_v59 }
 0x264   :  { %v442_v63 = vmax.f32 %v439_v58, %v441_v61  ;;  %v500_v0 = vmax.f32 %v497_v59, %v499_v62  ;;  %v462_v4 = vpop.permute.xlu0 %461  ;;  %v759_v58 = vld [vmem:[%s1377_s8 + $0x18] sm:$0xff] }
 0x265   :  { %v468_v6 = vadd.f32 %v467_v5, %v462_v4 }
 0x266   :  { %503 = vrot.lane.b32.xlu1 %v500_v0, %s1136_s29  ;;  %v444_v1 = vsel %vm443_vm4, %v442_v63, -1e+30 }
 0x267   :  { %v446_v2 = vsel %vm445_vm5, %v444_v1, -inf  ;;  %v471_v7 = vmul.f32 0.2, %v468_v6 }
 0x268   :  { %447 = vmax.xlane.f32.xlu0 %v446_v2 }
 0x269   :  { %v472_v9 = vmax.f32 %v468_v6, %v471_v7  ;;  %v871_v7 = vld [vmem:[%s1378_s9 + $0x1] ss:$0 sm:$0xff] }
 0x26b   :  { %v474_v10 = vsel %vm473_vm6, %v472_v9, -1e+30 }
 0x26c   :  { %v475_v11 = vsel %vm445_vm5, %v474_v10, -inf }
 0x28a   :  { %476 = vmax.xlane.f32.xlu1 %v475_v11 }
 0x2d8   :  { %v504_v13 = vpop.permute.xlu1 %503 }
 0x2d9   :  { %v506_v14 = vsel %vm501_vm7, %v504_v13, -1e+30 }
 0x2da   :  { %v507_v15 = vsel %vm445_vm5, %v506_v14, -inf }
 0x2db   :  { %508 = vmax.xlane.f32.xlu0 %v507_v15 }
 0x2f5   :  { %v448_v16 = vpop.xlane.xlu0 %447 }
 0x2f6   :  { %v449_v17 = vsub.f32 %v444_v1, %v448_v16 }
 0x2f8   :  { %v450_v18 = vmul.f32 1.442695, %v449_v17 }
 0x2fa   :  { %1042 = vpow2.f32 %v450_v18 }
 0x304   :  { %v1043_v19 = vpop.eup %1042 }
 0x305   :  { %v452_v20 = vsel %vm443_vm4, %v1043_v19, 0.0 }
 0x306   :  { %v453_v21 = vsel %vm445_vm5, %v452_v20, 0.0 }
 0x307   :  { %454 = vadd.xlane.f32.xlu0 %v453_v21 }
 0x317   :  { %v477_v22 = vpop.xlane.xlu1 %476 }
 0x318   :  { %v478_v23 = vsub.f32 %v474_v10, %v477_v22 }
 0x31a   :  { %v479_v24 = vmul.f32 1.442695, %v478_v23 }
 0x31c   :  { %1044 = vpow2.f32 %v479_v24 }
 0x31d   :  { %521 = vrot.lane.b32.xlu0 %v347_v46, %s1137_s6 }
 0x326   :  { %v1045_v25 = vpop.eup %1044 }
 0x327   :  { %v481_v28 = vsel %vm473_vm6, %v1045_v25, 0.0 }
 0x328   :  { %v482_v31 = vsel %vm445_vm5, %v481_v28, 0.0 }
 0x329   :  { %483 = vadd.xlane.f32.xlu1 %v482_v31 }
 0x368   :  { %v509_v32 = vpop.xlane.xlu0 %508 }
 0x369   :  { %v510_v33 = vsub.f32 %v506_v14, %v509_v32 }
 0x36b   :  { %v511_v34 = vmul.f32 1.442695, %v510_v33 }
 0x36d   :  { %1046 = vpow2.f32 %v511_v34 }
 0x377   :  { %v1047_v35 = vpop.eup %1046 }
 0x378   :  { %v513_v36 = vsel %vm501_vm7, %v1047_v35, 0.0 }
 0x379   :  { %v514_v37 = vsel %vm445_vm5, %v513_v36, 0.0 }
 0x37a   :  { %515 = vadd.xlane.f32.xlu1 %v514_v37 }
 0x38b   :  { %671 = vrot.lane.b32.xlu1 %v1301_v45, %s1138_s7 }
 0x394   :  { %v455_v38 = vpop.xlane.xlu0 %454 }
 0x395   :  { %v456_v39 = vmax.f32 %v455_v38, 1e-20 }
 0x397   :  { %1048 = vrcp.f32 %v456_v39 }
 0x398   :  { %v522_v40 = vpop.permute.xlu0 %521 }
 0x399   :  { %963 = vmatpush3.msra.mxu0 %v522_v40 }
 0x39a   :  { %972 = vmatprep.subr.mxu0 %v1132_v27 }
 0x3a1   :  { %v1049_v41 = vpop.eup %1048 }
 0x3a2   :  { %v458_v42 = vmul.f32 %v1049_v41, %v452_v20 }
 0x3a4   :  { %v459_v43 = vmul.f32 0.25, %v458_v42 }
 0x3a6   :  { %970 = vmatmul.mubr.msk.f32.vlgmr.msra.gmra.mrb[6].mxu1 %vm445_vm5, %v459_v43 }
 0x3a7   :  { %985 = vmatprep.mubr.msk.f32.mxu1 %vm1131_vm2, %v1132_v27  ;;  %1020 = vmatpush3.bf16.msra.mxu1 %v1019_v57 }
 0x3a8   :  { %1021 = vmatprep.subr.bf16.mxu1 %v1130_v26  ;;  %v870_v26 = vld [vmem:[%s1378_s9] ss:$0 sm:$0xff] }
 0x3b6   :  { %v484_v44 = vpop.xlane.xlu1 %483 }
 0x3b7   :  { %v485_v46 = vmax.f32 %v484_v44, 1e-20 }
 0x3b9   :  { %1050 = vrcp.f32 %v485_v46 }
 0x3c3   :  { %v1051_v47 = vpop.eup %1050 }
 0x3c4   :  { %v487_v45 = vmul.f32 %v1051_v47, %v481_v28 }
 0x3c6   :  { %v488_v48 = vmul.f32 0.25, %v487_v45 }
 0x3c8   :  { %965 = vmatmul.mubr.msk.f32.vlgmr.msra.gmra.mrb[4].mxu0 %vm445_vm5, %v488_v48 }
 0x3c9   :  { %974 = vmatprep.mubr.msk.f32.mxu0 %vm1131_vm2, %v1132_v27  ;;  %v758_v27 = vld [vmem:[%s1377_s8 + $0x10] sm:$0xff] }
 0x3ca   :  { %v1022_v59 = vpack.c.bf16 %v759_v58, %v758_v27 }
 0x3cc   :  { %1023 = vmatpush3.bf16.msra.mxu1 %v1022_v59 }
 0x407   :  { %v516_v49 = vpop.xlane.xlu1 %515 }
 0x408   :  { %v517_v50 = vmax.f32 %v516_v49, 1e-20 }
 0x40a   :  { %1052 = vrcp.f32 %v517_v50 }
 0x40b   :  { %v672_v51 = vpop.permute.xlu1 %671 }
 0x40c   :  { %973 = vmatpush3.msra.mxu0 %v672_v51 }
 0x414   :  { %v1053_v52 = vpop.eup %1052 }
 0x415   :  { %v519_v53 = vmul.f32 %v1053_v52, %v513_v36 }
 0x417   :  { %v520_v54 = vmul.f32 0.5, %v519_v53 }
 0x419   :  { %975 = vmatmul.mubr.msk.f32.vlgmr.msra.gmra.mrb[6].mxu0 %vm445_vm5, %v520_v54 }
 0x479   :  { %v666_v60 = vpop.f32.mrb[6].mxu1 }
 0x47a   :  { %v971_v61 = vpop.f32.mrb[7].mxu1 }
 0x49b   :  { %v593_v62 = vpop.f32.mrb[4].mxu0 }
 0x49c   :  { %v667_v63 = vadd.f32 %v666_v60, %v593_v62  ;;  %v966_v0 = vpop.f32.mrb[5].mxu0 }
 0x4ec   :  { %v743_v1 = vpop.f32.mrb[6].mxu0 }
 0x4ed   :  { %v747_v2 = vadd.f32 %v743_v1, %v667_v63  ;;  %v976_v3 = vpop.f32.mrb[7].mxu0 }
 0x4ef   :  { %v753_v4 = vadd.f32 %v870_v26, %v747_v2 }
 0x4f1   :  { %v754_v5 = vadd.f32 %v753_v4, %v155_v30 }
 0x4f3   :  { %v755_v6 = vmax.f32 %v754_v5, 0.0 }
 0x4f5   :  { %986 = vmatmul.mubr.msk.f32.vlgmr.msra.gmra.mrb[8].mxu1 %vm274_vm3, %v755_v6 }
 0x5c8   :  { %v834_v8 = vpop.f32.mrb[8].mxu1 }
 0x5c9   :  { %v835_v9 = vadd.f32 %v871_v7, %v834_v8  ;;  %v987_v10 = vpop.f32.mrb[9].mxu1 }
 0x5cb   :  { %838 = vst.msk [vmem:[#allocation7] sm:$0xff] %vm274_vm3, %v835_v9 }
 0x5cc   :  { %1109 = shalt.err (!%p1106_p6)
}
 0x5cd   :  { %s1110_s26 = scalar_lea.hbm %s1379_s10, 128 }
 0x5ce   :  { %p1111_p7 = scmp.ne.s32.totalorder %s1379_s10, %s1110_s26  ;;  %p1114_p8 = scmp.lt.u32.totalorder %s1110_s26, %s1379_s10 }
 0x5d0   :  { %p1116_p9 = pnand %p1114_p8, %p1111_p7 }
 0x5d2   :  { %1119 = shalt.err (!%p1116_p9)
}
 0x5d3   :  { %848 = dma.vmem_to_hbm [thread:$0]  %s846_s24, 128, %s1379_s10, [#allocation4]  }
 0x5d4   :  { %1124 = dma.done.wait [#allocation4], 128  }
 0x5d5   :  { %1125 = vsyncadd [#allocation4], 4294967168 }
 0x5d6   :  { %852 = vsyncpa [#allocation3], 1 }
 0x5d7   :  { %853 = vsyncpa [#allocation6], 1 }
 0x5d8   :  { %854 = vsyncpa [#allocation4], 1 }

</bundles_post_ra>
